<compile_context>
chip_gen: v5e
topology: v5e:2x2
jax: 0.10.0
libtpu: 0.0.40
codegen_flags: <defaults>
</compile_context>

<pallas_src>
import functools

import jax
import jax.numpy as jnp
from jax.experimental import pallas as pl
from jax.experimental.pallas import tpu as pltpu


def _tap(v, k, l_out, stride):
    """Columns k, k+stride, ..., k+stride*(l_out-1) of a 2-D value (taps along lanes)."""
    if stride == 1:
        return v[:, k:k + l_out]
    # TODO(synk): lane-strided slice may hit a slow Mosaic gather path; if stride>1 becomes
    # hot, de-interleave the input once (or fold the stride into the DMA) instead.
    return jax.lax.slice(
        v, (0, k), (v.shape[0], k + stride * (l_out - 1) + 1), (1, stride))


def _resblock_kernel(x_ref, w1_ref, w2_ref, wsc_ref, st_ref, o_ref,
                     *, kernel_size, stride, pad, l_out, compute_dtype):
    # x_ref:   (1, C_in, L)            unpadded input slab for one batch element
    # w1_ref:  (C_out, K*C_in)         conv1 weight, tap-major fused layout
    # w2_ref:  (C_out, K*C_out)        conv2 weight, tap-major fused layout
    # wsc_ref: (C_out, C_in)           1x1 shortcut conv weight
    # st_ref:  (C_out, 6)              packed folded-BN [s1,t1,s2,t2,s_sc,t_sc] (f32)
    # o_ref:   (1, C_out, L_out)
    c_out = w1_ref.shape[0]
    c_in = x_ref.shape[1]
    cdt = compute_dtype

    x = x_ref[0]                                                     # (C_in, L)

    # Folded BN scale/shift (kept in f32).
    s1, t1 = st_ref[:, 0:1], st_ref[:, 1:2]
    s2, t2 = st_ref[:, 2:3], st_ref[:, 3:4]
    ssc, tsc = st_ref[:, 4:5], st_ref[:, 5:6]

    # ---- conv1: one deep-contraction MXU matmul over the stacked taps ----
    if pad > 0:
        zx = jnp.zeros((c_in, pad), cdt)
        xp = jnp.concatenate([zx, x, zx], axis=-1)                   # (C_in, L + 2*pad)
    else:
        xp = x
    a1 = jnp.concatenate(
        [_tap(xp, k, l_out, stride) for k in range(kernel_size)], axis=0)  # (K*C_in, L_out)
    acc1 = jnp.dot(w1_ref[...], a1, preferred_element_type=jnp.float32)    # (C_out, L_out)
    h = jnp.maximum(acc1 * s1 + t1, 0.0)                             # BN1 (folded) + ReLU

    # ---- conv2 (stride 1): same trick on the in-register intermediate ----
    hb = h.astype(cdt)
    if pad > 0:
        zh = jnp.zeros((c_out, pad), cdt)
        hp = jnp.concatenate([zh, hb, zh], axis=-1)                  # (C_out, L_out + 2*pad)
    else:
        hp = hb
    a2 = jnp.concatenate(
        [hp[:, k:k + l_out] for k in range(kernel_size)], axis=0)    # (K*C_out, L_out)
    acc2 = jnp.dot(w2_ref[...], a2, preferred_element_type=jnp.float32)
    y = acc2 * s2 + t2                                               # BN2 (folded)

    # ---- shortcut: 1x1 conv with stride on the *unpadded* input + BN ----
    x_s = _tap(x, 0, l_out, stride)                                  # (C_in, L_out)
    sc = jnp.dot(wsc_ref[...], x_s, preferred_element_type=jnp.float32)
    sc = sc * ssc + tsc

    # ---- residual add + final ReLU ----
    o_ref[0] = jnp.maximum(y + sc, 0.0).astype(o_ref.dtype)


def residual_block_1d(x, params, *, kernel_size, stride,
                      compute_dtype=jnp.float32):
    """x: (N, C_in, L) float32. Returns (N, C_out, L_out) float32.

    compute_dtype=jnp.bfloat16 runs the matmuls on the native-bf16 MXU (v6e/v7x);
    BN/ReLU math stays f32.
    """
    n, c_in, l = x.shape
    c_out = params["w1"].shape[0]
    pad = (kernel_size - 1) // 2
    l_out = (l + 2 * pad - kernel_size) // stride + 1
    cdt = compute_dtype

    # Fuse taps into the weight layout matching the in-kernel im2col row order [k*C + c].
    w1f = jnp.transpose(params["w1"], (0, 2, 1)).reshape(
        c_out, kernel_size * c_in).astype(cdt)
    w2f = jnp.transpose(params["w2"], (0, 2, 1)).reshape(
        c_out, kernel_size * c_out).astype(cdt)
    wscf = params["w_sc"].astype(cdt)
    # One packed slab for all six folded-BN scale/shift vectors.
    st = jnp.concatenate(
        [params["s1"], params["t1"], params["s2"], params["t2"],
         params["s_sc"], params["t_sc"]], axis=1).astype(jnp.float32)  # (C_out, 6)
    xc = x.astype(cdt)

    kernel = functools.partial(
        _resblock_kernel, kernel_size=kernel_size, stride=stride, pad=pad,
        l_out=l_out, compute_dtype=cdt)

    grid_spec = pltpu.PrefetchScalarGridSpec(
        num_scalar_prefetch=0,
        grid=(n,),
        in_specs=[
            pl.BlockSpec((1, c_in, l), lambda b: (b, 0, 0)),                 # x (unpadded)
            pl.BlockSpec((c_out, kernel_size * c_in), lambda b: (0, 0)),     # w1 fused
            pl.BlockSpec((c_out, kernel_size * c_out), lambda b: (0, 0)),    # w2 fused
            pl.BlockSpec((c_out, c_in), lambda b: (0, 0)),                   # w_sc
            pl.BlockSpec((c_out, 6), lambda b: (0, 0)),                      # packed BN s/t
        ],
        out_specs=pl.BlockSpec((1, c_out, l_out), lambda b: (b, 0, 0)),
    )

    return pl.pallas_call(
        kernel,
        out_shape=jax.ShapeDtypeStruct((n, c_out, l_out), jnp.float32),
        grid_spec=grid_spec,
        compiler_params=pltpu.CompilerParams(
            dimension_semantics=("parallel",)),   # batch elements are independent
    )(xc, w1f, w2f, wscf, st)


# -------------------- deterministic parameter construction --------------------

def _fold_bn(gamma, beta, mean, var, conv_bias, eps=1e-5):
    """Fold eval-mode BatchNorm and the preceding conv bias into scale/shift."""
    s = gamma / jnp.sqrt(var + eps)
    t = beta + s * (conv_bias - mean)
    return s[:, None].astype(jnp.float32), t[:, None].astype(jnp.float32)


def make_params(key, c_in, c_out, kernel_size):
    ks = jax.random.split(key, 16)
    f32 = jnp.float32

    w1 = 0.1 * jax.random.normal(ks[0], (c_out, c_in, kernel_size), f32)
    b1 = 0.1 * jax.random.normal(ks[1], (c_out,), f32)
    g1 = 0.5 + jax.random.uniform(ks[2], (c_out,), f32)
    be1 = 0.1 * jax.random.normal(ks[3], (c_out,), f32)
    m1 = 0.1 * jax.random.normal(ks[4], (c_out,), f32)
    v1 = 0.5 + jax.random.uniform(ks[5], (c_out,), f32)

    w2 = 0.1 * jax.random.normal(ks[6], (c_out, c_out, kernel_size), f32)
    b2 = 0.1 * jax.random.normal(ks[7], (c_out,), f32)
    g2 = 0.5 + jax.random.uniform(ks[8], (c_out,), f32)
    be2 = 0.1 * jax.random.normal(ks[9], (c_out,), f32)
    m2 = 0.1 * jax.random.normal(ks[10], (c_out,), f32)
    v2 = 0.5 + jax.random.uniform(ks[11], (c_out,), f32)

    if c_in != c_out:
        w_sc = 0.1 * jax.random.normal(ks[12], (c_out, c_in), f32)
        b_sc = 0.1 * jax.random.normal(ks[13], (c_out,), f32)
        g_sc = 0.5 + jax.random.uniform(ks[14], (c_out,), f32)
        be_sc = 0.1 * jax.random.normal(ks[15], (c_out,), f32)
        m_sc = 0.05 * jnp.ones((c_out,), f32)
        v_sc = jnp.ones((c_out,), f32)
    else:
        # identity shortcut (nn.Sequential()): 1x1 identity conv, BN == identity
        w_sc = jnp.eye(c_out, c_in, dtype=f32)
        b_sc = jnp.zeros((c_out,), f32)
        g_sc = jnp.ones((c_out,), f32)
        be_sc = jnp.zeros((c_out,), f32)
        m_sc = jnp.zeros((c_out,), f32)
        v_sc = jnp.ones((c_out,), f32) - 1e-5  # cancels eps=1e-5 -> exact identity

    s1, t1 = _fold_bn(g1, be1, m1, v1, b1)
    s2, t2 = _fold_bn(g2, be2, m2, v2, b2)
    s_sc, t_sc = _fold_bn(g_sc, be_sc, m_sc, v_sc, b_sc)

    return dict(w1=w1, s1=s1, t1=t1, w2=w2, s2=s2, t2=t2,
                w_sc=w_sc, s_sc=s_sc, t_sc=t_sc)


# -------------------- pure-JAX reference (same math, XLA path) --------------------

def _conv1d_ref(x, w, stride, pad):
    n, c_in, l = x.shape
    c_out, _, k = w.shape
    l_out = (l + 2 * pad - k) // stride + 1
    xp = jnp.pad(x, ((0, 0), (0, 0), (pad, pad)))
    acc = jnp.zeros((n, c_out, l_out), jnp.float32)
    for kk in range(k):
        tap = jax.lax.slice(xp, (0, 0, kk),
                            (n, c_in, kk + stride * (l_out - 1) + 1),
                            (1, 1, stride))
        acc = acc + jnp.einsum("oc,ncl->nol", w[:, :, kk], tap)
    return acc


def residual_block_1d_ref(x, p, *, kernel_size, stride):
    pad = (kernel_size - 1) // 2
    h = _conv1d_ref(x, p["w1"], stride, pad)
    h = jnp.maximum(h * p["s1"][None] + p["t1"][None], 0.0)
    y = _conv1d_ref(h, p["w2"], 1, pad)
    y = y * p["s2"][None] + p["t2"][None]
    sc = _conv1d_ref(x, p["w_sc"][:, :, None], stride, 0)
    sc = sc * p["s_sc"][None] + p["t_sc"][None]
    return jnp.maximum(y + sc, 0.0)


if __name__ == "__main__":
    N, C_IN, C_OUT, L, K, STRIDE = 2, 4, 8, 16, 3, 1

    key = jax.random.PRNGKey(0)
    kx, kp = jax.random.split(key)
    x = jax.random.normal(kx, (N, C_IN, L), jnp.float32)
    params = make_params(kp, C_IN, C_OUT, K)

    ref = residual_block_1d_ref(x, params, kernel_size=K, stride=STRIDE)

    # f32 compute path: tight check against the XLA reference.
    out = residual_block_1d(x, params, kernel_size=K, stride=STRIDE,
                            compute_dtype=jnp.float32)
    out = jax.block_until_ready(out)
    assert out.shape == ref.shape, (out.shape, ref.shape)
    assert jnp.allclose(out, ref, rtol=1e-3, atol=1e-3), \
        float(jnp.max(jnp.abs(out - ref)))

    # bf16 MXU path (native on v6e/v7x): looser tolerance vs. the f32 reference.
    out_bf16 = residual_block_1d(x, params, kernel_size=K, stride=STRIDE,
                                 compute_dtype=jnp.bfloat16)
    out_bf16 = jax.block_until_ready(out_bf16)
    assert jnp.allclose(out_bf16, ref, rtol=5e-2, atol=5e-2), \
        float(jnp.max(jnp.abs(out_bf16 - ref)))

    print("KERNEL_OK")
</pallas_src>

<mosaic_0001>
module attributes {stable_mosaic.version = 11 : i64} {
  func.func @_resblock_kernel(%arg0: i32, %arg1: memref<1x4x16xf32, #tpu.memory_space<vmem>>, %arg2: memref<8x12xf32, #tpu.memory_space<vmem>>, %arg3: memref<8x24xf32, #tpu.memory_space<vmem>>, %arg4: memref<8x4xf32, #tpu.memory_space<vmem>>, %arg5: memref<8x6xf32, #tpu.memory_space<vmem>>, %arg6: memref<1x8x16xf32, #tpu.memory_space<vmem>>) attributes {dimension_semantics = [#tpu.dimension_semantics<parallel>], iteration_bounds = array<i64: 2>, scalar_prefetch = 0 : i64, scratch_operands = 0 : i64, tpu.core_type = #tpu.core_type<tc>, window_params = [{transform_indices = @transform_0, window_bounds = array<i64: 1, 4, 16>}, {pipeline_mode = #tpu.pipeline_mode<synchronous>, transform_indices = @transform_1, window_bounds = array<i64: 8, 12>}, {pipeline_mode = #tpu.pipeline_mode<synchronous>, transform_indices = @transform_2, window_bounds = array<i64: 8, 24>}, {pipeline_mode = #tpu.pipeline_mode<synchronous>, transform_indices = @transform_3, window_bounds = array<i64: 8, 4>}, {pipeline_mode = #tpu.pipeline_mode<synchronous>, transform_indices = @transform_4, window_bounds = array<i64: 8, 6>}, {transform_indices = @transform_5, window_bounds = array<i64: 1, 8, 16>}]} {
    %c0 = arith.constant 0 : index
    %c0_0 = arith.constant 0 : index
    %c0_1 = arith.constant 0 : index
    %0 = vector.load %arg1[%c0, %c0_0, %c0_1] : memref<1x4x16xf32, #tpu.memory_space<vmem>>, vector<1x4x16xf32>
    %1 = vector.shape_cast %0 : vector<1x4x16xf32> to vector<4x16xf32>
    %c0_2 = arith.constant 0 : index
    %c0_3 = arith.constant 0 : index
    %2 = vector.load %arg5[%c0_2, %c0_3] : memref<8x6xf32, #tpu.memory_space<vmem>>, vector<8x1xf32>
    %c0_4 = arith.constant 0 : index
    %c1 = arith.constant 1 : index
    %3 = vector.load %arg5[%c0_4, %c1] : memref<8x6xf32, #tpu.memory_space<vmem>>, vector<8x1xf32>
    %c0_5 = arith.constant 0 : index
    %c2 = arith.constant 2 : index
    %4 = vector.load %arg5[%c0_5, %c2] : memref<8x6xf32, #tpu.memory_space<vmem>>, vector<8x1xf32>
    %c0_6 = arith.constant 0 : index
    %c3 = arith.constant 3 : index
    %5 = vector.load %arg5[%c0_6, %c3] : memref<8x6xf32, #tpu.memory_space<vmem>>, vector<8x1xf32>
    %c0_7 = arith.constant 0 : index
    %c4 = arith.constant 4 : index
    %6 = vector.load %arg5[%c0_7, %c4] : memref<8x6xf32, #tpu.memory_space<vmem>>, vector<8x1xf32>
    %c0_8 = arith.constant 0 : index
    %c5 = arith.constant 5 : index
    %7 = vector.load %arg5[%c0_8, %c5] : memref<8x6xf32, #tpu.memory_space<vmem>>, vector<8x1xf32>
    %cst = arith.constant 0.000000e+00 : f32
    %8 = vector.broadcast %cst : f32 to vector<4x1xf32>
    %9 = tpu.concatenate %8, %1, %8 in 1 : vector<4x1xf32>, vector<4x16xf32>, vector<4x1xf32> -> vector<4x18xf32>
    %10 = vector.extract_strided_slice %9 {offsets = [0, 0], sizes = [4, 16], strides = [1, 1]} : vector<4x18xf32> to vector<4x16xf32>
    %11 = vector.extract_strided_slice %9 {offsets = [0, 1], sizes = [4, 16], strides = [1, 1]} : vector<4x18xf32> to vector<4x16xf32>
    %12 = vector.extract_strided_slice %9 {offsets = [0, 2], sizes = [4, 16], strides = [1, 1]} : vector<4x18xf32> to vector<4x16xf32>
    %13 = tpu.concatenate %10, %11, %12 in 0 : vector<4x16xf32>, vector<4x16xf32>, vector<4x16xf32> -> vector<12x16xf32>
    %c0_9 = arith.constant 0 : index
    %c0_10 = arith.constant 0 : index
    %14 = vector.load %arg2[%c0_9, %c0_10] : memref<8x12xf32, #tpu.memory_space<vmem>>, vector<8x12xf32>
    %cst_11 = arith.constant dense<0.000000e+00> : vector<8x16xf32>
    %15 = tpu.matmul %14, %13, %cst_11 {dimension_numbers = #tpu.dot_dimension_numbers<[1], [0], [0], [1], [0, 0, 1, 1], [], []>} : vector<8x12xf32>, vector<12x16xf32>, vector<8x16xf32> -> vector<8x16xf32>
    %16 = vector.broadcast %2 : vector<8x1xf32> to vector<8x16xf32>
    %17 = arith.mulf %15, %16 : vector<8x16xf32>
    %18 = vector.broadcast %3 : vector<8x1xf32> to vector<8x16xf32>
    %19 = arith.addf %17, %18 : vector<8x16xf32>
    %cst_12 = arith.constant 0.000000e+00 : f32
    %20 = vector.broadcast %cst_12 : f32 to vector<8x16xf32>
    %21 = arith.maximumf %19, %20 : vector<8x16xf32>
    %cst_13 = arith.constant 0.000000e+00 : f32
    %22 = vector.broadcast %cst_13 : f32 to vector<8x1xf32>
    %23 = tpu.concatenate %22, %21, %22 in 1 : vector<8x1xf32>, vector<8x16xf32>, vector<8x1xf32> -> vector<8x18xf32>
    %24 = vector.extract_strided_slice %23 {offsets = [0, 0], sizes = [8, 16], strides = [1, 1]} : vector<8x18xf32> to vector<8x16xf32>
    %25 = vector.extract_strided_slice %23 {offsets = [0, 1], sizes = [8, 16], strides = [1, 1]} : vector<8x18xf32> to vector<8x16xf32>
    %26 = vector.extract_strided_slice %23 {offsets = [0, 2], sizes = [8, 16], strides = [1, 1]} : vector<8x18xf32> to vector<8x16xf32>
    %27 = tpu.concatenate %24, %25, %26 in 0 : vector<8x16xf32>, vector<8x16xf32>, vector<8x16xf32> -> vector<24x16xf32>
    %c0_14 = arith.constant 0 : index
    %c0_15 = arith.constant 0 : index
    %28 = vector.load %arg3[%c0_14, %c0_15] : memref<8x24xf32, #tpu.memory_space<vmem>>, vector<8x24xf32>
    %cst_16 = arith.constant dense<0.000000e+00> : vector<8x16xf32>
    %29 = tpu.matmul %28, %27, %cst_16 {dimension_numbers = #tpu.dot_dimension_numbers<[1], [0], [0], [1], [0, 0, 1, 1], [], []>} : vector<8x24xf32>, vector<24x16xf32>, vector<8x16xf32> -> vector<8x16xf32>
    %30 = vector.broadcast %4 : vector<8x1xf32> to vector<8x16xf32>
    %31 = arith.mulf %29, %30 : vector<8x16xf32>
    %32 = vector.broadcast %5 : vector<8x1xf32> to vector<8x16xf32>
    %33 = arith.addf %31, %32 : vector<8x16xf32>
    %c0_17 = arith.constant 0 : index
    %c0_18 = arith.constant 0 : index
    %34 = vector.load %arg4[%c0_17, %c0_18] : memref<8x4xf32, #tpu.memory_space<vmem>>, vector<8x4xf32>
    %cst_19 = arith.constant dense<0.000000e+00> : vector<8x16xf32>
    %35 = tpu.matmul %34, %1, %cst_19 {dimension_numbers = #tpu.dot_dimension_numbers<[1], [0], [0], [1], [0, 0, 1, 1], [], []>} : vector<8x4xf32>, vector<4x16xf32>, vector<8x16xf32> -> vector<8x16xf32>
    %36 = vector.broadcast %6 : vector<8x1xf32> to vector<8x16xf32>
    %37 = arith.mulf %35, %36 : vector<8x16xf32>
    %38 = vector.broadcast %7 : vector<8x1xf32> to vector<8x16xf32>
    %39 = arith.addf %37, %38 : vector<8x16xf32>
    %40 = arith.addf %33, %39 : vector<8x16xf32>
    %cst_20 = arith.constant 0.000000e+00 : f32
    %41 = vector.broadcast %cst_20 : f32 to vector<8x16xf32>
    %42 = arith.maximumf %40, %41 : vector<8x16xf32>
    %c0_21 = arith.constant 0 : index
    %c0_22 = arith.constant 0 : index
    %c0_23 = arith.constant 0 : index
    %43 = vector.load %arg6[%c0_21, %c0_22, %c0_23] : memref<1x8x16xf32, #tpu.memory_space<vmem>>, vector<1x8x16xf32>
    %44 = vector.shape_cast %43 : vector<1x8x16xf32> to vector<8x16xf32>
    %45 = vector.shape_cast %42 : vector<8x16xf32> to vector<1x8x16xf32>
    tpu.vector_store %arg6[%c0_21, %c0_22, %c0_23], %45 {strides = array<i32>} : memref<1x8x16xf32, #tpu.memory_space<vmem>>, vector<1x8x16xf32>,
    return
  }
  func.func @transform_0(%arg0: i32) -> (i32, i32, i32) {
    %c0_i32 = arith.constant 0 : i32
    %c0_i32_0 = arith.constant 0 : i32
    %c0_i32_1 = arith.constant 0 : i32
    return %arg0, %c0_i32, %c0_i32_0 : i32, i32, i32
  }
  func.func @transform_1(%arg0: i32) -> (i32, i32) {
    %c0_i32 = arith.constant 0 : i32
    %c0_i32_0 = arith.constant 0 : i32
    %c0_i32_1 = arith.constant 0 : i32
    return %c0_i32, %c0_i32_0 : i32, i32
  }
  func.func @transform_2(%arg0: i32) -> (i32, i32) {
    %c0_i32 = arith.constant 0 : i32
    %c0_i32_0 = arith.constant 0 : i32
    %c0_i32_1 = arith.constant 0 : i32
    return %c0_i32, %c0_i32_0 : i32, i32
  }
  func.func @transform_3(%arg0: i32) -> (i32, i32) {
    %c0_i32 = arith.constant 0 : i32
    %c0_i32_0 = arith.constant 0 : i32
    %c0_i32_1 = arith.constant 0 : i32
    return %c0_i32, %c0_i32_0 : i32, i32
  }
  func.func @transform_4(%arg0: i32) -> (i32, i32) {
    %c0_i32 = arith.constant 0 : i32
    %c0_i32_0 = arith.constant 0 : i32
    %c0_i32_1 = arith.constant 0 : i32
    return %c0_i32, %c0_i32_0 : i32, i32
  }
  func.func @transform_5(%arg0: i32) -> (i32, i32, i32) {
    %c0_i32 = arith.constant 0 : i32
    %c0_i32_0 = arith.constant 0 : i32
    %c0_i32_1 = arith.constant 0 : i32
    return %arg0, %c0_i32, %c0_i32_0 : i32, i32, i32
  }
}

</mosaic_0001>

<bundles_post_ra>
// kernel: tpu_custom_call.1
= control target key start
LH: loop header
LB: loop body
LE: loop exit
PB: predicated region body
PF: predicated region fallthrough
CT: control target
= control target key end

     0   :  { %10 = vsyncpa [#allocation3], 0  ;;  %s954_s0 = inlined_call_operand.vmem [shape: f32[2,4,16], index: 0, kind: input, shape index: {}]   ;;  %s955_s1 = inlined_call_operand.hbm [shape: f32[8,12], index: 1, kind: input, shape index: {}]   ;;  %s956_s2 = inlined_call_operand.hbm [shape: f32[8,24], index: 2, kind: input, shape index: {}]   ;;  %s957_s3 = inlined_call_operand.vmem [shape: f32[8,4], index: 3, kind: input, shape index: {}]   ;;  %s958_s4 = inlined_call_operand.hbm [shape: f32[8,6], index: 4, kind: input, shape index: {}]   ;;  %s959_s5 = inlined_call_operand.hbm [shape: f32[2,8,16], index: 5, kind: output, shape index: {}]  }
   0x1   :  { %11 = vsyncpa [#allocation6], 0 }
   0x2   :  { %12 = vsyncpa [#allocation4], 0 }
   0x3   :  { %14 = vsyncpa [#allocation4 + $0x1], 0  ;;  %s829_s18 = smov 0   ;;  %s831_s19 = smov 0  }
   0x4   :  { %s833_s20 = smov 0   ;;  %s835_s21 = smov 0  }
   0x5 LB: > { %s850_s22 = sadd.s32 4294967295, %s785_s21   ;;  %s517_s23 = sadd.s32 4294967294, %s785_s21   ;;  %s785_s21 = sphi %s835_s21, %s966_s21   ;;  %s781_s20 = sphi %s833_s20, %s965_s20   ;;  %s777_s19 = sphi %s831_s19, %s964_s19   ;;  %s773_s18 = sphi %s829_s18, %s963_s18  }
   0x6   : > { %s854_s24 = sadd.s32 1, %s785_s21   ;;  %s137_s25 = sadd.s32 1, %s781_s20 }
   0x7   : > { %s134_s26 = ssub.s32 %s785_s21, %s854_s24  ;;  %p147_p0 = scmp.ne.s32.totalorder %s781_s20, %s777_s19 }
   0x8   : > { %p135_p1 = scmp.eq.s32.totalorder %s134_s26, 0  ;;  %p148_p2 = scmp.eq.s32.totalorder %s850_s22, 1 }
   0x9   : > { %p153_p3 = scmp.ne.s32.totalorder %s777_s19, %s773_s18  ;;  %p154_p4 = scmp.eq.s32.totalorder %s517_s23, 1 }
   0xa   : > { %s865_s27 = scalar_select %p135_p1, %s781_s20, %s137_s25  }
   0xb   : > { %p867_p5 = por %p148_p2, %p147_p0  ;;  %p871_p6 = por %p154_p4, %p153_p3 }
   0xc   : > { %p518_p7 = scmp.ge.s32.totalorder %s785_s21, 1  ;;  %p161_p8 = scmp.lt.s32.totalorder %s785_s21, 3 }
   0xd   : > { %p567_p9 = scmp.eq.s32.totalorder %s850_s22, 0  ;;  %s185_s8 = sshll.u32 %s956_s2, 4  ;;  %s186_s8 = int_to_ptr.hbm [resolvable:$true] %s185_s8 }
   0xe   : > { %p878_p10 = pnand %p518_p7, %p161_p8  ;;  %s787_s9 = smov [#allocation5]  }
   0xf   : > { %s187_s10 = sshll.u32 %s787_s9, 4  ;;  %s173_s13 = sshll.u32 %s955_s1, 4  ;;  %s188_s10 = int_to_ptr.vmem [resolvable:$true] %s187_s10  ;;  %s174_s13 = int_to_ptr.hbm [resolvable:$true] %s173_s13 }
  0x10   : > { %p553_p11 = pneg %p878_p10  ;;  %s200_s16 = sshll.u32 %s958_s4, 4  ;;  %s201_s16 = int_to_ptr.hbm [resolvable:$true] %s200_s16 }
  0x11   : > { %s788_s17 = smov [#allocation2]   ;;  %s789_s25 = smov [#allocation7]  }
  0x12   : > { %p554_p12 = pnand %p567_p9, %p553_p11  ;;  %s175_s23 = sshll.u32 %s788_s17, 4  ;;  %s176_s23 = int_to_ptr.vmem [resolvable:$true] %s175_s23 }
  0x13   : > { %s202_s26 = sshll.u32 %s789_s25, 4  ;;  %222 = sbr.rel (%p878_p10) target bundleno = 752 (0x2f0), region = 40  ;;  %s203_s26 = int_to_ptr.vmem [resolvable:$true] %s202_s26 }
  0x14   : > { %559 = dma.hbm_to_vmem [thread:$0]  (!%p554_p12), %s186_s8, 128, %s188_s10, [#allocation6]  }
  0x15   : > { %556 = dma.hbm_to_vmem [thread:$0]  (!%p554_p12), %s174_s13, 128, %s176_s23, [#allocation3]  }
  0x16   : > { %562 = dma.hbm_to_vmem [thread:$0]  (!%p554_p12), %s201_s16, 128, %s203_s26, [#allocation6]  }
  0x18   : > { %760 = dma.done.wait (%p567_p9), [#allocation3], 128  }
  0x19   : > { %762 = vsyncadd (%p567_p9), [#allocation3], 4294967168 }
  0x1a   : > { %764 = dma.done.wait (%p567_p9), [#allocation6], 256  }
  0x1b   : > { %766 = vsyncadd (%p567_p9), [#allocation6], 4294967040  ;;  %p260_p13 = scmp.lt.s32.totalorder %s850_s22, 1  ;;  %s790_s10 = smov 1   ;;  %vm270_vm0 = vcmask 7168   ;;  %vm272_vm1 = vcmask 138240  }
  0x1c   : > { %s791_s11 = smov 126   ;;  %s792_s12 = smov 127   ;;  %vm281_vm2 = vcmask 1043456   ;;  %v265_v5 = vld [vmem:[#allocation7] sm:$0xff]  ;;  %v793_v6 = vmov 0   ;;  %v794_v7 = vmov 1  }
  0x1d   : > { %s261_s6 = scalar_select %p260_p13, %s850_s22, 1  ;;  %618 = vset.pattern.permute.xlu1 %v793_v6  ;;  %619 = vset.pattern.permute.xlu2 %v794_v7  ;;  %v283_v10 = vld [vmem:[#allocation2] sm:$0xff]  ;;  %vm284_vm3 = vcmask 97280   ;;  %vm371_vm4 = vcmask 31744   ;;  %v795_v22 = vmov 4   ;;  %v796_v23 = vmov 3  }
  0x1e   : > { %317 = vperm.xlu2 %619, %v265_v5   ;;  %v370_v21 = vld [vmem:[%s957_s3] sm:$0xff]  ;;  %621 = vset.pattern.permute.xlu0 %v795_v22  ;;  %v797_v24 = vmov 2   ;;  %v798_v25 = vmov 5   ;;  %v335_v28 = vld [vmem:[#allocation5] sm:$0xff]  ;;  %vm336_vm5 = vcmask 195584   ;;  %s257_s15 = sand.u32 1, %s777_s19  }
  0x1f   : > { %s528_s7 = sshll.u32 %s261_s6, 2  ;;  %s527_s16 = sshll.u32 %s257_s15, 3  ;;  %vm409_vm6 = vcmask 130048  }
  0x20   : > { %s263_s9 = scalar_lea.vmem %s954_s0, %s528_s7  ;;  %s536_s17 = sshll.u32 %s850_s22, 3 }
  0x21   : > { %v264_v0 = vld [vmem:[%s263_s9] sm:$0xf]  ;;  %s422_s26 = scalar_lea.hbm %s959_s5, %s536_s17  ;;  %s259_s6 = scalar_lea.vmem [#allocation8], %s527_s16 }
  0x22   : > { %267 = vrot.lane.b32.xlu0 %v264_v0, %s790_s10  ;;  %533 = vmatpush.msk.msra.mxu2 %vm281_vm2, %v264_v0  ;;  %s424_s7 = sshll.u32 %s259_s6, 4  ;;  %s426_s8 = sshll.u32 %s422_s26, 4  ;;  %s425_s7 = int_to_ptr.vmem [resolvable:$true] %s424_s7  ;;  %s427_s8 = int_to_ptr.hbm [resolvable:$true] %s426_s8 }
  0x23   : > { %534 = vmatmul.msk.f32.vlgmr.msra.gmra.mxu2 %vm371_vm4, %v370_v21  ;;  %s412_s22 = scalar_lea.sflag [#allocation4], %s257_s15  ;;  %s729_s30 = sshra.s32 %s427_s8, 4  ;;  %s730_s30 = int_to_ptr.hbm [resolvable:$true] %s729_s30 }
  0x24   : > { %s731_s9 = scalar_lea.hbm %s730_s30, 8  ;;  %p736_p3 = scmp.lt.s32.totalorder %s730_s30, %s959_s5 }
  0x25   : > { %p732_p0 = scmp.ne.s32.totalorder %s730_s30, %s731_s9 }
  0x26   : > { %620 = vset.pattern.permute.xlu2 %v797_v24 }
  0x27   : > { %p733_p1 = pnand %p732_p0, %p867_p5 }
  0x29   : > { %p734_p2 = pneg %p733_p1 }
  0x78   : > { %v318_v14 = vpop.permute.xlu2 %317 }
  0x94   : > { %v268_v1 = vpop.permute.xlu0 %267 }
  0x95   : > { %v271_v2 = vsel %vm270_vm0, 0.0, %v268_v1 }
  0x96   : > { %v273_v3 = vsel %vm272_vm1, %v271_v2, 0.0 }
  0x97   : > { %279 = vrot.lane.b32.xlu0 %v273_v3, %s791_s11  ;;  %v275_v4 = vrot.slane %v273_v3, 4 }
  0x99   : > { %276 = vrot.lane.b32.xlu1 %v275_v4, %s792_s12 }
  0xa1   : > { %312 = vperm.xlu1 %618, %v265_v5  }
  0xa6   : > { %v394_v31 = vpop.f32.mrf.mxu2 }
  0xa9   : > { %622 = vset.pattern.permute.xlu1 %v796_v23 }
 0x109   : > { %v280_v8 = vpop.permute.xlu0 %279 }
 0x10a   : > { %529 = vmatpush.msk.msra.mxu0 %vm281_vm2, %v280_v8 }
 0x10b   : > { %v277_v9 = vpop.permute.xlu1 %276 }
 0x10c   : > { %v282_v11 = vsel %vm281_vm2, %v273_v3, %v277_v9 }
 0x10d   : > { %305 = vmatpush.msra.mxu0 %v282_v11 }
 0x10e   : > { %530 = vmatmul.msk.f32.vlgmr.msra.gmra.mxu0 %vm284_vm3, %v283_v10 }
 0x113   : > { %v313_v12 = vpop.permute.xlu1 %312 }
 0x18b   : > { %v307_v13 = vpop.f32.mrf.mxu0 }
 0x18c   : > { %v315_v15 = vmul.f32 %v313_v12, %v307_v13 }
 0x18e   : > { %v320_v16 = vadd.f32 %v318_v14, %v315_v15 }
 0x190   : > { %v321_v17 = vmax.f32 %v320_v16, 0.0 }
 0x192   : > { %323 = vrot.lane.b32.xlu2 %v321_v17, %s790_s10 }
 0x19a   : > { %361 = vperm.xlu2 %620, %v265_v5  }
 0x1a2   : > { %623 = vset.pattern.permute.xlu2 %v798_v25 }
 0x1a3   : > { %403 = vperm.xlu2 %623, %v265_v5  }
 0x1ec   : > { %v324_v18 = vpop.permute.xlu2 %323 }
 0x1ed   : > { %v326_v19 = vsel %vm270_vm0, 0.0, %v324_v18 }
 0x1ee   : > { %v327_v20 = vsel %vm272_vm1, %v326_v19, 0.0 }
 0x1ef   : > { %329 = vrot.lane.b32.xlu1 %v327_v20, %s792_s12  ;;  %332 = vrot.lane.b32.xlu0 %v327_v20, %s791_s11  ;;  %s735_s12 = scalar_lea.hbm %s959_s5, 16 }
 0x1f0   : > { %p737_p4 = scmp.lt.s32.totalorder %s735_s12, %s731_s9 }
 0x1f2   : > { %p738_p7 = por %p737_p4, %p736_p3 }
 0x1f4   : > { %v362_v29 = vpop.permute.xlu2 %361  ;;  %p739_p8 = pnand %p738_p7, %p734_p2 }
 0x1f7   : > { %398 = vperm.xlu0 %621, %v265_v5   ;;  %366 = vperm.xlu1 %622, %v265_v5  }
 0x1fd   : > { %v404_v33 = vpop.permute.xlu2 %403 }
 0x1ff   : > { %624 = vset.pattern.permute.xlu0 %v798_v25 }
 0x261   : > { %v333_v26 = vpop.permute.xlu0 %332  ;;  %v330_v27 = vpop.permute.xlu1 %329 }
 0x262   : > { %353 = vmatpush.msra.mxu1 %v333_v26 }
 0x264   : > { %354 = vmatpush.msra.mxu1 %v330_v27 }
 0x266   : > { %531 = vmatpush.msk.msra.mxu1 %vm272_vm1, %v326_v19 }
 0x267   : > { %532 = vmatmul.msk.f32.vlgmr.msra.gmra.mxu1 %vm336_vm5, %v335_v28 }
 0x269   : > { %v399_v30 = vpop.permute.xlu0 %398  ;;  %v367_v35 = vpop.permute.xlu1 %366 }
 0x26a   : > { %v401_v32 = vmul.f32 %v399_v30, %v394_v31 }
 0x26c   : > { %v406_v37 = vadd.f32 %v404_v33, %v401_v32 }
 0x2e4   : > { %v357_v34 = vpop.f32.mrf.mxu1 }
 0x2e5   : > { %v364_v36 = vmul.f32 %v362_v29, %v357_v34 }
 0x2e7   : > { %v369_v38 = vadd.f32 %v367_v35, %v364_v36 }
 0x2e9   : > { %v407_v39 = vadd.f32 %v406_v37, %v369_v38 }
 0x2eb   : > { %v408_v40 = vmax.f32 %v407_v39, 0.0 }
 0x2ed   : > { %410 = vst.msk [vmem:[%s259_s6] sm:$0xff] %vm409_vm6, %v408_v40 }
 0x2ee   : > { %742 = shalt.err (!%p739_p8)
}
 0x2ef   : > { %551 = dma.vmem_to_hbm [thread:$0]  (%p867_p5), %s425_s7, 128, %s427_s8, %s412_s22  }
 0x2f0 PF: > { %p573_p9 = scmp.ge.s32.totalorder %s785_s21, 2  ;;  %s438_s15 = sand.u32 1, %s773_s18  }
 0x2f1   : > { %s439_s16 = scalar_lea.sflag [#allocation4], %s438_s15 }
 0x2f2   : > { %p564_p10 = pnand %p573_p9, %p871_p6 }
 0x2f4   : > { %p565_p11 = pneg %p564_p10 }
 0x2f6   : > { %768 = dma.done.wait (%p565_p11), %s439_s16, 128  }
 0x2f7   : > { %770 = vsyncadd (%p565_p11), %s439_s16, 4294967168  ;;  %p17_p12 = scmp.ge.s32.totalorder %s854_s24, 4   ;;  %s963_s18 = smov %s777_s19 }
 0x2f8   : > { %s964_s19 = smov %s781_s20  ;;  %s965_s20 = smov %s865_s27 }
 0x2f9   : > { %s966_s21 = smov %s854_s24  ;;  %19 = sbr.rel (!%p17_p12) target bundleno = 5 (0x5), region = 88 }
 0x2fe   :  { %445 = vsyncpa [#allocation3], 1 }
 0x2ff   :  { %447 = vsyncpa [#allocation3 + $0x1], 1 }
 0x300   :  { %448 = vsyncpa [#allocation6], 1 }
 0x301   :  { %449 = vsyncpa [#allocation4], 1 }
 0x302   :  { %451 = vsyncpa [#allocation4 + $0x1], 1 }

</bundles_post_ra>
